<compile_context>
chip_gen: v6e
topology: v6e:2x2x1
jax: 0.10.0
libtpu: 0.0.40
codegen_flags: <defaults>
</compile_context>

<pallas_src>
import math
import numpy as np
import jax
import jax.numpy as jnp
from jax.experimental import pallas as pl
from jax.experimental.pallas import tpu as pltpu


# ------------- deterministic filter construction (numpy, trace time) -------------
def _kaiser_beta(kernel_size, half_width):
    half_size = kernel_size // 2
    delta_f = 4.0 * half_width
    A = 2.285 * (half_size - 1) * math.pi * delta_f + 7.95
    if A > 50.0:
        return 0.1102 * (A - 8.7)
    elif A >= 21.0:
        return 0.5842 * (A - 21.0) ** 0.4 + 0.07886 * (A - 21.0)
    return 0.0


def kaiser_sinc_filter1d(cutoff, half_width, kernel_size):
    # numpy mirror of the torch helper (torch.kaiser_window(periodic=False) == np.kaiser)
    even = kernel_size % 2 == 0
    half_size = kernel_size // 2
    beta = _kaiser_beta(kernel_size, half_width)
    window = np.kaiser(kernel_size, beta)
    if even:
        time = np.arange(-half_size, half_size) + 0.5
    else:
        time = np.arange(kernel_size) - half_size
    if cutoff == 0:
        filt = np.zeros_like(time)
    else:
        filt = 2.0 * cutoff * window * np.sinc(2.0 * cutoff * time)
        filt = filt / filt.sum()
    return filt.reshape(1, 1, kernel_size).astype(np.float32)


# ---------------- polyphase tap table (pure python, trace time) ----------------
def _polyphase_taps(ratio, ksize, pad, pad_left, filt):
    """dict: input offset d (relative to the *unpadded* signal) ->
             list of (phase p, weight), weights already scaled by `ratio`."""
    taps = {}
    for p in range(ratio):
        r_p = (p + pad_left) % ratio
        q_p = (p + pad_left) // ratio
        n_taps = -(-(ksize - r_p) // ratio)
        for j in range(n_taps):
            lo = q_p - j  # offset into the replicate-padded signal
            # every read must stay inside the `pad`-wide replicate halo
            assert 0 <= lo <= 2 * pad, "unsupported ratio/kernel_size combination"
            d = lo - pad  # offset into the unpadded signal
            w = float(ratio) * float(filt[ratio * j + r_p])
            taps.setdefault(d, []).append((p, w))
    return taps


# --------------------------------- Pallas kernel ---------------------------------
_RC = 8     # rows per compute strip (one sublane tile)
_TC = 512   # lanes per compute strip (keeps per-strip f32 temporaries in vregs)


def _make_upsample_kernel(taps, ratio, T, block_rows, max_l, max_r):
    offsets = sorted(taps)
    width = max_l + T + max_r

    def kernel(x_ref, out_ref, xp_ref):
        # ---- stage the block into a replicate-padded VMEM buffer (in-kernel 'edge' pad)
        for r0 in range(0, block_rows, _RC):
            if max_l:
                xp_ref[r0:r0 + _RC, 0:max_l] = jnp.broadcast_to(
                    x_ref[r0:r0 + _RC, 0:1], (_RC, max_l))
            if max_r:
                xp_ref[r0:r0 + _RC, max_l + T:width] = jnp.broadcast_to(
                    x_ref[r0:r0 + _RC, T - 1:T], (_RC, max_r))
            for c0 in range(0, T, _TC):
                cw = min(_TC, T - c0)
                xp_ref[r0:r0 + _RC, max_l + c0:max_l + c0 + cw] = (
                    x_ref[r0:r0 + _RC, c0:c0 + cw])

        # ---- polyphase FIR, strip-mined so accumulators live in vregs
        for r0 in range(0, block_rows, _RC):
            for c0 in range(0, T, _TC):
                cw = min(_TC, T - c0)
                accs = [None] * ratio
                for d in offsets:                       # unique offsets, shared by phases
                    lo = max_l + c0 + d
                    s = xp_ref[r0:r0 + _RC, lo:lo + cw].astype(jnp.float32)
                    for p, w in taps[d]:                # weights baked in, pre-scaled
                        accs[p] = s * w if accs[p] is None else accs[p] + s * w
                for p in range(ratio):                  # phase-major, dense stores
                    out_ref[r0:r0 + _RC, p * T + c0:p * T + c0 + cw] = (
                        accs[p].astype(out_ref.dtype))

    return kernel


# ----------------------------------- wrapper -----------------------------------
def _pick_block_rows(rows, T, target_elems=512 * 1024):
    """Largest multiple-of-8 row block whose (rows x T) tile stays within the
    VMEM budget; keep >=2 grid steps when possible (v7x megacore)."""
    rows_p8 = -(-rows // 8) * 8
    br = max(8, (target_elems // max(T, 1)) // 8 * 8)
    br = min(br, 2048, rows_p8)
    if rows_p8 >= 16:
        br = min(br, max(8, (rows_p8 // 16) * 8))
    return int(br)


def upsample1d(x, ratio=2, kernel_size=None):
    B, C, T = x.shape
    ksize = int(6 * ratio // 2) * 2 if kernel_size is None else kernel_size
    stride = ratio
    pad = ksize // ratio - 1
    pad_left = pad * stride + (ksize - stride) // 2

    filt = kaiser_sinc_filter1d(0.5 / ratio, 0.6 / ratio, ksize)[0, 0]   # numpy (K,)
    taps = _polyphase_taps(ratio, ksize, pad, pad_left, filt)
    offs = sorted(taps)
    max_l = max(0, -offs[0])      # left replicate halo needed in the staging buffer
    max_r = max(0, offs[-1])      # right replicate halo needed

    rows = B * C
    block_rows = _pick_block_rows(rows, T)
    rows_p = -(-rows // block_rows) * block_rows

    x2 = x.reshape(rows, T)
    if rows_p != rows:            # rare: only when B*C is not a multiple of block_rows
        x2 = jnp.pad(x2, ((0, rows_p - rows), (0, 0)))

    kernel = _make_upsample_kernel(taps, ratio, T, block_rows, max_l, max_r)
    out = pl.pallas_call(
        kernel,
        out_shape=jax.ShapeDtypeStruct((rows_p, ratio * T), x.dtype),
        grid=(rows_p // block_rows,),
        in_specs=[pl.BlockSpec((block_rows, T), lambda i: (i, 0))],
        out_specs=pl.BlockSpec((block_rows, ratio * T), lambda i: (i, 0)),
        scratch_shapes=[pltpu.VMEM((block_rows, max_l + T + max_r), x.dtype)],
        compiler_params=pltpu.CompilerParams(
            dimension_semantics=("parallel",),
            vmem_limit_bytes=48 * 1024 * 1024,
        ),
    )(x2)

    out = out[:rows]                                   # (rows, ratio*T), phase-major
    # phase interleave: (rows, ratio, T) -> (rows, T, ratio) -> (B, C, ratio*T)
    # TODO(synk): fuse this interleave into the kernel to drop the last HBM pass.
    out = out.reshape(rows, ratio, T).transpose(0, 2, 1)
    return out.reshape(B, C, ratio * T)


# ------------------------------ numpy reference ------------------------------
def _ref_numpy(x, ratio):
    x = np.asarray(x, dtype=np.float64)
    B, C, T = x.shape
    ksize = int(6 * ratio // 2) * 2
    stride = ratio
    pad = ksize // ratio - 1
    pad_left = pad * stride + (ksize - stride) // 2
    pad_right = pad * stride + (ksize - stride + 1) // 2
    filt = kaiser_sinc_filter1d(0.5 / ratio, 0.6 / ratio, ksize)[0, 0].astype(np.float64)
    xp = np.pad(x, ((0, 0), (0, 0), (pad, pad)), mode="edge")
    Tp = T + 2 * pad
    Lout = (Tp - 1) * stride + ksize
    y = np.zeros((B, C, Lout), dtype=np.float64)
    for n in range(Tp):  # depthwise conv_transpose1d
        y[..., n * stride:n * stride + ksize] += xp[..., n:n + 1] * filt
    y = ratio * y
    return y[..., pad_left:Lout - pad_right]


if __name__ == "__main__":
    key = jax.random.PRNGKey(0)
    ratio = 2

    # required small example
    B, C, T = 2, 4, 16
    x = jax.random.normal(key, (B, C, T), dtype=jnp.float32)
    y = jax.block_until_ready(upsample1d(x, ratio=ratio))
    assert y.shape == (B, C, ratio * T), y.shape
    np.testing.assert_allclose(np.asarray(y), _ref_numpy(np.asarray(x), ratio),
                               rtol=1e-4, atol=1e-4)

    # extra shapes exercising row padding, multi-step grids and the in-kernel
    # strip-mining / remainder paths
    for (b, c, t) in [(2, 13, 200), (1, 3, 700)]:
        k2 = jax.random.fold_in(key, b * 100000 + c * 1000 + t)
        xi = jax.random.normal(k2, (b, c, t), dtype=jnp.float32)
        yi = jax.block_until_ready(upsample1d(xi, ratio=ratio))
        assert yi.shape == (b, c, ratio * t), yi.shape
        np.testing.assert_allclose(np.asarray(yi), _ref_numpy(np.asarray(xi), ratio),
                                   rtol=1e-4, atol=1e-4)

    print("KERNEL_OK")
</pallas_src>

<mosaic_0001>
module attributes {stable_mosaic.version = 11 : i64} {
  func.func @kernel(%arg0: i32, %arg1: memref<8x16xf32, #tpu.memory_space<vmem>>, %arg2: memref<8x32xf32, #tpu.memory_space<vmem>>, %arg3: memref<8x22xf32, #tpu.memory_space<vmem>>) attributes {dimension_semantics = [#tpu.dimension_semantics<parallel>], iteration_bounds = array<i64: 1>, scalar_prefetch = 0 : i64, scratch_operands = 1 : i64, tpu.core_type = #tpu.core_type<tc>, window_params = [{transform_indices = @transform_0, window_bounds = array<i64: 8, 16>}, {transform_indices = @transform_1, window_bounds = array<i64: 8, 32>}]} {
    %c0 = arith.constant 0 : index
    %c0_0 = arith.constant 0 : index
    %0 = vector.load %arg1[%c0, %c0_0] : memref<8x16xf32, #tpu.memory_space<vmem>>, vector<8x1xf32>
    %1 = vector.shape_cast %0 : vector<8x1xf32> to vector<8x1xf32>
    %2 = vector.broadcast %1 : vector<8x1xf32> to vector<8x3xf32>
    %c0_1 = arith.constant 0 : index
    %c0_2 = arith.constant 0 : index
    %3 = vector.load %arg3[%c0_1, %c0_2] : memref<8x22xf32, #tpu.memory_space<vmem>>, vector<8x3xf32>
    tpu.vector_store %arg3[%c0_1, %c0_2], %2 {strides = array<i32>} : memref<8x22xf32, #tpu.memory_space<vmem>>, vector<8x3xf32>,
    %c0_3 = arith.constant 0 : index
    %c15 = arith.constant 15 : index
    %4 = vector.load %arg1[%c0_3, %c15] : memref<8x16xf32, #tpu.memory_space<vmem>>, vector<8x1xf32>
    %5 = vector.shape_cast %4 : vector<8x1xf32> to vector<8x1xf32>
    %6 = vector.broadcast %5 : vector<8x1xf32> to vector<8x3xf32>
    %c0_4 = arith.constant 0 : index
    %c19 = arith.constant 19 : index
    %7 = vector.load %arg3[%c0_4, %c19] : memref<8x22xf32, #tpu.memory_space<vmem>>, vector<8x3xf32>
    tpu.vector_store %arg3[%c0_4, %c19], %6 {strides = array<i32>} : memref<8x22xf32, #tpu.memory_space<vmem>>, vector<8x3xf32>,
    %c0_5 = arith.constant 0 : index
    %c0_6 = arith.constant 0 : index
    %8 = vector.load %arg1[%c0_5, %c0_6] : memref<8x16xf32, #tpu.memory_space<vmem>>, vector<8x16xf32>
    %c0_7 = arith.constant 0 : index
    %c3 = arith.constant 3 : index
    %9 = vector.load %arg3[%c0_7, %c3] : memref<8x22xf32, #tpu.memory_space<vmem>>, vector<8x16xf32>
    tpu.vector_store %arg3[%c0_7, %c3], %8 {strides = array<i32>} : memref<8x22xf32, #tpu.memory_space<vmem>>, vector<8x16xf32>,
    %c0_8 = arith.constant 0 : index
    %c0_9 = arith.constant 0 : index
    %10 = vector.load %arg3[%c0_8, %c0_9] : memref<8x22xf32, #tpu.memory_space<vmem>>, vector<8x16xf32>
    %cst = arith.constant 0.00405793311 : f32
    %11 = vector.broadcast %cst : f32 to vector<8x16xf32>
    %12 = arith.mulf %10, %11 : vector<8x16xf32>
    %c0_10 = arith.constant 0 : index
    %c1 = arith.constant 1 : index
    %13 = vector.load %arg3[%c0_10, %c1] : memref<8x22xf32, #tpu.memory_space<vmem>>, vector<8x16xf32>
    %cst_11 = arith.constant -0.0510869287 : f32
    %14 = vector.broadcast %cst_11 : f32 to vector<8x16xf32>
    %15 = arith.mulf %13, %14 : vector<8x16xf32>
    %16 = arith.addf %12, %15 : vector<8x16xf32>
    %cst_12 = arith.constant 0.0187789276 : f32
    %17 = vector.broadcast %cst_12 : f32 to vector<8x16xf32>
    %18 = arith.mulf %13, %17 : vector<8x16xf32>
    %c0_13 = arith.constant 0 : index
    %c2 = arith.constant 2 : index
    %19 = vector.load %arg3[%c0_13, %c2] : memref<8x22xf32, #tpu.memory_space<vmem>>, vector<8x16xf32>
    %cst_14 = arith.constant 0.257145226 : f32
    %20 = vector.broadcast %cst_14 : f32 to vector<8x16xf32>
    %21 = arith.mulf %19, %20 : vector<8x16xf32>
    %22 = arith.addf %16, %21 : vector<8x16xf32>
    %cst_15 = arith.constant -0.115314752 : f32
    %23 = vector.broadcast %cst_15 : f32 to vector<8x16xf32>
    %24 = arith.mulf %19, %23 : vector<8x16xf32>
    %25 = arith.addf %18, %24 : vector<8x16xf32>
    %c0_16 = arith.constant 0 : index
    %c3_17 = arith.constant 3 : index
    %26 = vector.load %arg3[%c0_16, %c3_17] : memref<8x22xf32, #tpu.memory_space<vmem>>, vector<8x16xf32>
    %cst_18 = arith.constant 0.886419594 : f32
    %27 = vector.broadcast %cst_18 : f32 to vector<8x16xf32>
    %28 = arith.mulf %26, %27 : vector<8x16xf32>
    %29 = arith.addf %22, %28 : vector<8x16xf32>
    %cst_19 = arith.constant 0.886419594 : f32
    %30 = vector.broadcast %cst_19 : f32 to vector<8x16xf32>
    %31 = arith.mulf %26, %30 : vector<8x16xf32>
    %32 = arith.addf %25, %31 : vector<8x16xf32>
    %c0_20 = arith.constant 0 : index
    %c4 = arith.constant 4 : index
    %33 = vector.load %arg3[%c0_20, %c4] : memref<8x22xf32, #tpu.memory_space<vmem>>, vector<8x16xf32>
    %cst_21 = arith.constant -0.115314752 : f32
    %34 = vector.broadcast %cst_21 : f32 to vector<8x16xf32>
    %35 = arith.mulf %33, %34 : vector<8x16xf32>
    %36 = arith.addf %29, %35 : vector<8x16xf32>
    %cst_22 = arith.constant 0.257145226 : f32
    %37 = vector.broadcast %cst_22 : f32 to vector<8x16xf32>
    %38 = arith.mulf %33, %37 : vector<8x16xf32>
    %39 = arith.addf %32, %38 : vector<8x16xf32>
    %c0_23 = arith.constant 0 : index
    %c5 = arith.constant 5 : index
    %40 = vector.load %arg3[%c0_23, %c5] : memref<8x22xf32, #tpu.memory_space<vmem>>, vector<8x16xf32>
    %cst_24 = arith.constant 0.0187789276 : f32
    %41 = vector.broadcast %cst_24 : f32 to vector<8x16xf32>
    %42 = arith.mulf %40, %41 : vector<8x16xf32>
    %43 = arith.addf %36, %42 : vector<8x16xf32>
    %cst_25 = arith.constant -0.0510869287 : f32
    %44 = vector.broadcast %cst_25 : f32 to vector<8x16xf32>
    %45 = arith.mulf %40, %44 : vector<8x16xf32>
    %46 = arith.addf %39, %45 : vector<8x16xf32>
    %c0_26 = arith.constant 0 : index
    %c6 = arith.constant 6 : index
    %47 = vector.load %arg3[%c0_26, %c6] : memref<8x22xf32, #tpu.memory_space<vmem>>, vector<8x16xf32>
    %cst_27 = arith.constant 0.00405793311 : f32
    %48 = vector.broadcast %cst_27 : f32 to vector<8x16xf32>
    %49 = arith.mulf %47, %48 : vector<8x16xf32>
    %50 = arith.addf %46, %49 : vector<8x16xf32>
    %c0_28 = arith.constant 0 : index
    %c0_29 = arith.constant 0 : index
    %51 = vector.load %arg2[%c0_28, %c0_29] : memref<8x32xf32, #tpu.memory_space<vmem>>, vector<8x16xf32>
    tpu.vector_store %arg2[%c0_28, %c0_29], %43 {strides = array<i32>} : memref<8x32xf32, #tpu.memory_space<vmem>>, vector<8x16xf32>,
    %c0_30 = arith.constant 0 : index
    %c16 = arith.constant 16 : index
    %52 = vector.load %arg2[%c0_30, %c16] : memref<8x32xf32, #tpu.memory_space<vmem>>, vector<8x16xf32>
    tpu.vector_store %arg2[%c0_30, %c16], %50 {strides = array<i32>} : memref<8x32xf32, #tpu.memory_space<vmem>>, vector<8x16xf32>,
    return
  }
  func.func @transform_0(%arg0: i32) -> (i32, i32) {
    %c0_i32 = arith.constant 0 : i32
    %c0_i32_0 = arith.constant 0 : i32
    return %arg0, %c0_i32 : i32, i32
  }
  func.func @transform_1(%arg0: i32) -> (i32, i32) {
    %c0_i32 = arith.constant 0 : i32
    %c0_i32_0 = arith.constant 0 : i32
    return %arg0, %c0_i32 : i32, i32
  }
}

</mosaic_0001>

<bundles_post_ra>
// kernel: tpu_custom_call.1
= control target key start
LH: loop header
LB: loop body
LE: loop exit
PB: predicated region body
PF: predicated region fallthrough
CT: control target
= control target key end

     0   :  { %6 = vsyncpa [#allocation4], 0  ;;  %s204_s0 = inlined_call_operand.hbm [shape: f32[8,16], index: 0, kind: input, shape index: {}]   ;;  %s205_s1 = inlined_call_operand.hbm [shape: f32[8,32], index: 1, kind: output, shape index: {}]  }
   0x1   :  { %7 = vsyncpa [#allocation5], 0  ;;  %s177_s6 = smov [#allocation3]  }
   0x2   :  { %s14_s7 = sshll.u32 %s177_s6, 4  ;;  %s15_s7 = int_to_ptr.vmem [resolvable:$true] %s14_s7 }
   0x3   :  { %s141_s8 = scalar_lea.vmem %s15_s7, 128  ;;  %p146_p1 = scmp.lt.s32.totalorder %s15_s7, %s15_s7 }
   0x4   :  { %p142_p0 = scmp.ne.s32.totalorder %s15_s7, %s141_s8  ;;  %p147_p2 = scmp.lt.s32.totalorder %s141_s8, %s141_s8 }
   0x6   :  { %p148_p3 = por %p147_p2, %p146_p1 }
   0x8   :  { %p149_p4 = pnand %p148_p3, %p142_p0 }
   0xa   :  { %152 = shalt.err (!%p149_p4)
}
   0xb   :  { %17 = dma.hbm_to_vmem [thread:$0]  %s204_s0, 128, %s15_s7, [#allocation4]  }
   0xc   :  { %173 = dma.done.wait [#allocation4], 128  }
   0xd   :  { %174 = vsyncadd [#allocation4], 4294967168  ;;  %v178_v0 = vmov 0   ;;  %v21_v1 = vld [vmem:[#allocation3] sm:$0xff]  ;;  %s179_s11 = smov 3   ;;  %v180_v2 = vmov 15  }
   0xe   :  { %131 = vset.pattern.permute.xlu0 %v178_v0  ;;  %39 = vrot.lane.b32.xlu1 %v21_v1, %s179_s11  ;;  %vm27_vm0 = vcmask 23552   ;;  %vm35_vm1 = vcmask 179352   ;;  %vm42_vm2 = vcmask 154648   ;;  %s181_s0 = smov 127   ;;  %s182_s12 = smov 125   ;;  %vm97_vm3 = vcmask 130048  }
   0xf   :  { %24 = vperm.xlu0 %131, %v21_v1   ;;  %s183_s13 = smov 126   ;;  %s184_s14 = smov 123   ;;  %vm103_vm4 = vcmask 261248  }
  0x10   :  { %s185_s15 = smov 124   ;;  %s186_s16 = smov 15  }
  0x11   :  { %s187_s17 = smov [#allocation6]  }
  0x12   :  { %s111_s18 = sshll.u32 %s187_s17, 4  ;;  %s112_s18 = int_to_ptr.vmem [resolvable:$true] %s111_s18 }
  0x13   :  { %132 = vset.pattern.permute.xlu0 %v180_v2  ;;  %s153_s19 = scalar_lea.vmem %s112_s18, 128  ;;  %p158_p6 = scmp.lt.s32.totalorder %s112_s18, %s112_s18 }
  0x14   :  { %32 = vperm.xlu0 %132, %v21_v1   ;;  %p154_p5 = scmp.ne.s32.totalorder %s112_s18, %s153_s19  ;;  %p159_p7 = scmp.lt.s32.totalorder %s153_s19, %s153_s19 }
  0x16   :  { %p160_p8 = por %p159_p7, %p158_p6 }
  0x18   :  { %p161_p9 = pnand %p160_p8, %p154_p5 }
  0x80   :  { %v40_v4 = vpop.permute.xlu1 %39 }
  0x8a   :  { %v25_v3 = vpop.permute.xlu0 %24 }
  0x8b   :  { %28 = vst.msk [vmem:[#allocation2] sm:$0xff] %vm27_vm0, %v25_v3 }
  0x8f   :  { %v33_v5 = vpop.permute.xlu0 %32 }
  0x90   :  { %36 = vst.msk [vmem:[#allocation2] sm:$0xff] %vm35_vm1, %v33_v5 }
  0x91   :  { %43 = vst.msk [vmem:[#allocation2] sm:$0xff] %vm42_vm2, %v40_v4 }
  0x98   :  { %v44_v6 = vld [vmem:[#allocation2] sm:$0xff] }
  0x99   :  { %v59_v7 = vmul.f32 -0.11531475, %v44_v6  ;;  %v53_v8 = vmul.f32 0.25714523, %v44_v6  ;;  %v65_v9 = vmul.f32 0.8864196, %v44_v6 }
  0x9a   :  { %v45_v10 = vmul.f32 0.004057933, %v44_v6  ;;  %v46_v11 = vmul.f32 -0.05108693, %v44_v6  ;;  %v52_v12 = vmul.f32 0.018778928, %v44_v6 }
  0x9b   :  { %61 = vrot.lane.b32.xlu1 %v59_v7, %s181_s0  ;;  %79 = vrot.lane.b32.xlu0 %v53_v8, %s182_s12 }
  0x9f   :  { %71 = vrot.lane.b32.xlu1 %v65_v9, %s183_s13  ;;  %93 = vrot.lane.b32.xlu0 %v45_v10, %s184_s14 }
  0xa3   :  { %88 = vrot.lane.b32.xlu1 %v46_v11, %s185_s15  ;;  %55 = vrot.lane.b32.xlu0 %v53_v8, %s183_s13 }
  0xa7   :  { %48 = vrot.lane.b32.xlu1 %v46_v11, %s181_s0  ;;  %75 = vrot.lane.b32.xlu0 %v59_v7, %s185_s15 }
  0xab   :  { %67 = vrot.lane.b32.xlu1 %v65_v9, %s182_s12 }
  0xaf   :  { %84 = vrot.lane.b32.xlu1 %v52_v12, %s184_s14 }
 0x10d   :  { %v62_v13 = vpop.permute.xlu1 %61  ;;  %v80_v14 = vpop.permute.xlu0 %79 }
 0x10e   :  { %v64_v15 = vadd.f32 %v62_v13, %v52_v12 }
 0x111   :  { %v72_v16 = vpop.permute.xlu1 %71  ;;  %v94_v18 = vpop.permute.xlu0 %93 }
 0x112   :  { %v74_v17 = vadd.f32 %v72_v16, %v64_v15 }
 0x114   :  { %v82_v19 = vadd.f32 %v80_v14, %v74_v17 }
 0x115   :  { %v89_v20 = vpop.permute.xlu1 %88  ;;  %v56_v23 = vpop.permute.xlu0 %55 }
 0x116   :  { %v91_v21 = vadd.f32 %v89_v20, %v82_v19 }
 0x118   :  { %v96_v22 = vadd.f32 %v94_v18, %v91_v21 }
 0x119   :  { %v49_v24 = vpop.permute.xlu1 %48  ;;  %v76_v29 = vpop.permute.xlu0 %75 }
 0x11a   :  { %v51_v25 = vadd.f32 %v49_v24, %v45_v10  ;;  %100 = vrot.lane.b32.xlu0 %v96_v22, %s186_s16 }
 0x11c   :  { %v58_v26 = vadd.f32 %v56_v23, %v51_v25 }
 0x11d   :  { %v68_v27 = vpop.permute.xlu1 %67 }
 0x11e   :  { %v70_v28 = vadd.f32 %v68_v27, %v58_v26 }
 0x120   :  { %v78_v30 = vadd.f32 %v76_v29, %v70_v28 }
 0x121   :  { %v85_v31 = vpop.permute.xlu1 %84 }
 0x122   :  { %v87_v32 = vadd.f32 %v85_v31, %v78_v30 }
 0x124   :  { %98 = vst.msk [vmem:[#allocation6] sm:$0xff] %vm97_vm3, %v87_v32 }
 0x18c   :  { %v101_v33 = vpop.permute.xlu0 %100 }
 0x18d   :  { %104 = vst.msk [vmem:[#allocation6] sm:$0xff] %vm103_vm4, %v101_v33 }
 0x18e   :  { %164 = shalt.err (!%p161_p9)
}
 0x18f   :  { %114 = dma.vmem_to_hbm [thread:$0]  %s112_s18, 128, %s205_s1, [#allocation5]  }
 0x190   :  { %175 = dma.done.wait [#allocation5], 128  }
 0x191   :  { %176 = vsyncadd [#allocation5], 4294967168 }
 0x192   :  { %118 = vsyncpa [#allocation4], 1 }
 0x193   :  { %119 = vsyncpa [#allocation5], 1 }

</bundles_post_ra>
